<compile_context>
chip_gen: v6e
topology: v6e:2x2x1
jax: 0.10.0
libtpu: 0.0.40
codegen_flags: <defaults>
</compile_context>

<pallas_src>
import functools

import jax
import jax.numpy as jnp
from jax import lax
from jax.experimental import pallas as pl
from jax.experimental.pallas import tpu as pltpu


def _critic_loss_kernel(xp_ref, w9_ref, cb_ref, fcw_ref, out_ref):
    # xp_ref : [Bt, H*W, Kp]  bf16  lane-dense im2col patches for Bt samples
    # w9_ref : [Kp, 128]      bf16  conv taps, zero-padded in K and in lanes
    # cb_ref : [1, 128]       f32   conv bias (padded lanes are exactly 0)
    # fcw_ref: [H*W, 128]     f32   folded Linear-head weight map (padded lanes 0)
    # out_ref: [Bt, 1, 128]   f32   per-sample, per-lane partial sums of critic
    bt, hw, kp = xp_ref.shape
    lanes = w9_ref.shape[-1]

    # Single MXU push: [Bt*H*W, Kp] x [Kp, 128] -> f32 [Bt*H*W, 128].
    # (leading-dim merge/split reshapes are layout no-ops: trailing dims stay
    #  (8,128)-tile aligned.)
    x = xp_ref[...].reshape(bt * hw, kp)
    conv = jnp.dot(x, w9_ref[...], preferred_element_type=jnp.float32)

    # Bias + ReLU epilogue in f32 (v5e-friendly).  Padded lanes stay exactly 0.
    act = jnp.maximum(conv + cb_ref[...], 0.0).reshape(bt, hw, lanes)

    # Fused Linear head: critic(state)[b] = sum_{hw,c} act[b,hw,c]*fcw[hw,c] + bias.
    # Store lane-wise partial sums (unmasked 128-wide vst); the tiny cross-lane
    # finish + bias + (-mean) happen in the wrapper.
    out_ref[...] = jnp.sum(act * fcw_ref[...], axis=1, keepdims=True)


def prepare_critic_params(conv_w, conv_b, fc_w, fc_b, H, W, lanes=128):
    """Hoisted, done ONCE at parameter-load time (not per forward call)."""
    Cout, Cin, KH, KW = conv_w.shape
    if (KH, KW) != (3, 3):
        raise ValueError("critic conv must be 3x3")
    if Cout > lanes:
        # Fail loudly (per review): single-slab design assumes Cout <= 128 lanes.
        raise ValueError(f"Cout={Cout} > {lanes} not supported by this kernel")

    K = KH * KW * Cin
    Kp = max(lanes, pl.cdiv(K, lanes) * lanes)        # pad contraction dim to >=128

    # Conv taps flattened for a single contraction, ordering (kh, kw, ci) to
    # match the wrapper's patch construction:
    #   w9[(kh*3 + kw)*Cin + ci, co] = conv_w[co, ci, kh, kw]
    w9 = jnp.transpose(conv_w, (2, 3, 1, 0)).reshape(K, Cout)
    w9p = jnp.zeros((Kp, lanes), jnp.bfloat16).at[:K, :Cout].set(
        w9.astype(jnp.bfloat16))

    cbp = jnp.zeros((1, lanes), jnp.float32).at[0, :Cout].set(
        conv_b.astype(jnp.float32))

    # Linear head: the mean over output units commutes with the Linear layer,
    # so fold fc_w [N, Cout*H*W] into one NHWC-ordered map [H*W, Cout] (exact
    # algebra; with N=1 this is simply the permuted weight vector).
    w_mean = jnp.mean(fc_w.astype(jnp.float32), axis=0)            # [Cout*H*W]
    wmap = jnp.transpose(w_mean.reshape(Cout, H, W), (1, 2, 0)).reshape(H * W, Cout)
    fcwp = jnp.zeros((H * W, lanes), jnp.float32).at[:, :Cout].set(wmap)

    fc_bias_mean = jnp.mean(fc_b.astype(jnp.float32))
    return w9p, cbp, fcwp, fc_bias_mean


def _pick_batch_block(B):
    """>=2 grid steps when B>=2 (both v7x TCs busy), capped per-step work."""
    if B <= 1:
        return 1
    # TODO(synk): generation-specific table (v7x has 64 MiB VMEM vs 128 MiB)
    # if B ever gets large enough for per-step VMEM to matter.
    return max(1, min(16, B // 2))


@jax.jit
def custom_loss_forward(state_nchw, params):
    """loss = mean(-critic(state)) with the fused Pallas critic kernel."""
    w9p, cbp, fcwp, fc_bias_mean = params
    B, Cin, H, W = state_nchw.shape
    Kp, lanes = w9p.shape
    HW = H * W
    K = 9 * Cin

    # Lane-dense im2col built in the wrapper: NCHW -> NHWC, bf16 cast, SAME-pad,
    # 9 tap slices concatenated along the channel (lane) axis, K padded to Kp.
    # One fused XLA pass over a tiny activation; ordering matches w9p.
    x_nhwc = jnp.transpose(state_nchw, (0, 2, 3, 1)).astype(jnp.bfloat16)
    x_pad = jnp.pad(x_nhwc, ((0, 0), (1, 1), (1, 1), (0, 0)))
    taps = [x_pad[:, dh:dh + H, dw:dw + W, :]
            for dh in range(3) for dw in range(3)]
    patches = jnp.concatenate(taps, axis=-1).reshape(B, HW, K)
    patches = jnp.pad(patches, ((0, 0), (0, 0), (0, Kp - K)))

    # Batch-block the grid: Bt samples per step (padded rows contribute only to
    # discarded partials, never to the loss).
    bt = _pick_batch_block(B)
    n_blocks = pl.cdiv(B, bt)
    b_pad = n_blocks * bt
    if b_pad != B:
        patches = jnp.pad(patches, ((0, b_pad - B), (0, 0), (0, 0)))

    partials = pl.pallas_call(
        _critic_loss_kernel,
        grid=(n_blocks,),
        out_shape=jax.ShapeDtypeStruct((b_pad, 1, lanes), jnp.float32),
        in_specs=[
            pl.BlockSpec((bt, HW, Kp), lambda i: (i, 0, 0)),   # lane-dense patches
            pl.BlockSpec((Kp, lanes), lambda i: (0, 0)),       # conv taps (bf16)
            pl.BlockSpec((1, lanes), lambda i: (0, 0)),        # conv bias  (f32)
            pl.BlockSpec((HW, lanes), lambda i: (0, 0)),       # FC map     (f32)
        ],
        out_specs=pl.BlockSpec((bt, 1, lanes), lambda i: (i, 0, 0)),
        compiler_params=pltpu.CompilerParams(
            dimension_semantics=("parallel",)),
    )(patches, w9p, cbp, fcwp)

    critic = jnp.sum(partials[:B], axis=(1, 2)) + fc_bias_mean  # [B] critic values
    return -jnp.mean(critic)                                    # torch.mul(-1, .).mean()


def reference_loss(state, conv_w, conv_b, fc_w, fc_b):
    """Pure-JAX f32 reference reproducing the PyTorch semantics exactly."""
    y = lax.conv_general_dilated(
        state, conv_w, window_strides=(1, 1), padding=((1, 1), (1, 1)),
        dimension_numbers=("NCHW", "OIHW", "NCHW"))
    y = jnp.maximum(y + conv_b[None, :, None, None], 0.0)
    critic = y.reshape(y.shape[0], -1) @ fc_w.T + fc_b[None, :]
    return jnp.mean(-1.0 * critic)


if __name__ == "__main__":
    B, Cin, H, W = 2, 4, 16, 16
    Cout, N = 8, 1                      # critic value head: N = 1

    key = jax.random.PRNGKey(0)
    k1, k2, k3, k4, k5 = jax.random.split(key, 5)
    state  = jax.random.normal(k1, (B, Cin, H, W), jnp.float32)
    conv_w = jax.random.normal(k2, (Cout, Cin, 3, 3), jnp.float32) * 0.1
    conv_b = jax.random.normal(k3, (Cout,), jnp.float32) * 0.1
    fc_w   = jax.random.normal(k4, (N, Cout * H * W), jnp.float32) * 0.02
    fc_b   = jax.random.normal(k5, (N,), jnp.float32) * 0.02

    # Weight re-layouts hoisted out of the forward path (done once).
    params = prepare_critic_params(conv_w, conv_b, fc_w, fc_b, H, W)

    loss = jax.block_until_ready(custom_loss_forward(state, params))
    ref = reference_loss(state, conv_w, conv_b, fc_w, fc_b)

    assert loss.shape == (), loss.shape
    # NOTE: activations/conv taps go through bf16 on the MXU (f32 accumulate),
    # so bit-exactness vs. PyTorch f32 conv is not expected; loss-level only.
    assert jnp.allclose(loss, ref, atol=2e-2, rtol=2e-2), (
        "loss=%f ref=%f" % (float(loss), float(ref)))
    print("KERNEL_OK")
</pallas_src>

<mosaic_0001>
module attributes {stable_mosaic.version = 11 : i64} {
  func.func @_critic_loss_kernel(%arg0: i32, %arg1: memref<1x256x128xbf16, #tpu.memory_space<vmem>>, %arg2: memref<128x128xbf16, #tpu.memory_space<vmem>>, %arg3: memref<1x128xf32, #tpu.memory_space<vmem>>, %arg4: memref<256x128xf32, #tpu.memory_space<vmem>>, %arg5: memref<1x1x128xf32, #tpu.memory_space<vmem>>) attributes {dimension_semantics = [#tpu.dimension_semantics<parallel>], iteration_bounds = array<i64: 2>, scalar_prefetch = 0 : i64, scratch_operands = 0 : i64, tpu.core_type = #tpu.core_type<tc>, window_params = [{transform_indices = @transform_0, window_bounds = array<i64: 1, 256, 128>}, {pipeline_mode = #tpu.pipeline_mode<synchronous>, transform_indices = @transform_1, window_bounds = array<i64: 128, 128>}, {pipeline_mode = #tpu.pipeline_mode<synchronous>, transform_indices = @transform_2, window_bounds = array<i64: 1, 128>}, {pipeline_mode = #tpu.pipeline_mode<synchronous>, transform_indices = @transform_3, window_bounds = array<i64: 256, 128>}, {transform_indices = @transform_4, window_bounds = array<i64: 1, 1, 128>}]} {
    %c0 = arith.constant 0 : index
    %c0_0 = arith.constant 0 : index
    %c0_1 = arith.constant 0 : index
    %0 = vector.load %arg1[%c0, %c0_0, %c0_1] : memref<1x256x128xbf16, #tpu.memory_space<vmem>>, vector<1x256x128xbf16>
    %1 = vector.shape_cast %0 : vector<1x256x128xbf16> to vector<256x128xbf16>
    %c0_2 = arith.constant 0 : index
    %c0_3 = arith.constant 0 : index
    %2 = vector.load %arg2[%c0_2, %c0_3] : memref<128x128xbf16, #tpu.memory_space<vmem>>, vector<128x128xbf16>
    %cst = arith.constant dense<0.000000e+00> : vector<256x128xf32>
    %3 = tpu.matmul %1, %2, %cst {dimension_numbers = #tpu.dot_dimension_numbers<[1], [0], [0], [1], [0, 0, 1, 1], [], []>} : vector<256x128xbf16>, vector<128x128xbf16>, vector<256x128xf32> -> vector<256x128xf32>
    %c0_4 = arith.constant 0 : index
    %c0_5 = arith.constant 0 : index
    %4 = vector.load %arg3[%c0_4, %c0_5] : memref<1x128xf32, #tpu.memory_space<vmem>>, vector<1x128xf32>
    %5 = vector.broadcast %4 : vector<1x128xf32> to vector<256x128xf32>
    %6 = arith.addf %3, %5 : vector<256x128xf32>
    %cst_6 = arith.constant 0.000000e+00 : f32
    %7 = vector.broadcast %cst_6 : f32 to vector<256x128xf32>
    %8 = arith.maximumf %6, %7 : vector<256x128xf32>
    %9 = vector.shape_cast %8 : vector<256x128xf32> to vector<1x256x128xf32>
    %c0_7 = arith.constant 0 : index
    %c0_8 = arith.constant 0 : index
    %10 = vector.load %arg4[%c0_7, %c0_8] : memref<256x128xf32, #tpu.memory_space<vmem>>, vector<256x128xf32>
    %11 = vector.shape_cast %10 : vector<256x128xf32> to vector<1x256x128xf32>
    %12 = arith.mulf %9, %11 : vector<1x256x128xf32>
    %cst_9 = arith.constant dense<0.000000e+00> : vector<1x128xf32>
    %13 = vector.multi_reduction <add>, %12, %cst_9 [1] : vector<1x256x128xf32> to vector<1x128xf32>
    %14 = vector.shape_cast %13 : vector<1x128xf32> to vector<1x1x128xf32>
    %c0_10 = arith.constant 0 : index
    %c0_11 = arith.constant 0 : index
    %c0_12 = arith.constant 0 : index
    %15 = vector.load %arg5[%c0_10, %c0_11, %c0_12] : memref<1x1x128xf32, #tpu.memory_space<vmem>>, vector<1x1x128xf32>
    tpu.vector_store %arg5[%c0_10, %c0_11, %c0_12], %14 {strides = array<i32>} : memref<1x1x128xf32, #tpu.memory_space<vmem>>, vector<1x1x128xf32>,
    return
  }
  func.func @transform_0(%arg0: i32) -> (i32, i32, i32) {
    %c0_i32 = arith.constant 0 : i32
    %c0_i32_0 = arith.constant 0 : i32
    %c0_i32_1 = arith.constant 0 : i32
    return %arg0, %c0_i32, %c0_i32_0 : i32, i32, i32
  }
  func.func @transform_1(%arg0: i32) -> (i32, i32) {
    %c0_i32 = arith.constant 0 : i32
    %c0_i32_0 = arith.constant 0 : i32
    %c0_i32_1 = arith.constant 0 : i32
    return %c0_i32, %c0_i32_0 : i32, i32
  }
  func.func @transform_2(%arg0: i32) -> (i32, i32) {
    %c0_i32 = arith.constant 0 : i32
    %c0_i32_0 = arith.constant 0 : i32
    %c0_i32_1 = arith.constant 0 : i32
    return %c0_i32, %c0_i32_0 : i32, i32
  }
  func.func @transform_3(%arg0: i32) -> (i32, i32) {
    %c0_i32 = arith.constant 0 : i32
    %c0_i32_0 = arith.constant 0 : i32
    %c0_i32_1 = arith.constant 0 : i32
    return %c0_i32, %c0_i32_0 : i32, i32
  }
  func.func @transform_4(%arg0: i32) -> (i32, i32, i32) {
    %c0_i32 = arith.constant 0 : i32
    %c0_i32_0 = arith.constant 0 : i32
    %c0_i32_1 = arith.constant 0 : i32
    return %arg0, %c0_i32, %c0_i32_0 : i32, i32, i32
  }
}

</mosaic_0001>

<bundles_post_ra>
// kernel: custom_loss_forward.1
= control target key start
LH: loop header
LB: loop body
LE: loop exit
PB: predicated region body
PF: predicated region fallthrough
CT: control target
= control target key end

     0   :  { %s924_s15 = smov 0   ;;  %s1144_s0 = inlined_call_operand.vmem [shape: bf16[2,256,128], index: 0, kind: input, shape index: {}]   ;;  %s1145_s1 = inlined_call_operand.vmem [shape: bf16[128,128], index: 1, kind: input, shape index: {}]   ;;  %s1146_s2 = inlined_call_operand.vmem [shape: f32[1,128], index: 2, kind: input, shape index: {}]   ;;  %s1147_s3 = inlined_call_operand.vmem [shape: f32[256,128], index: 3, kind: input, shape index: {}]   ;;  %s1148_s4 = inlined_call_operand.vmem [shape: f32[2,1,128], index: 4, kind: output, shape index: {}]  }
   0x1 LB: > { %s736_s16 = sadd.s32 4294967295, %s897_s15   ;;  %p740_p0 = scmp.ge.s32.totalorder %s897_s15, 1  ;;  %s897_s15 = sphi %s924_s15, %s14_s15  }
   0x2   : > { %p162_p1 = scmp.lt.s32.totalorder %s897_s15, 3 }
   0x4   : > { %p163_p2 = pnand %p740_p0, %p162_p1 }
   0x5   : > { %p186_p3 = scmp.lt.s32.totalorder (!%p163_p2), %s736_s16, 1 }
   0x6   : > { %166 = sbr.rel (%p163_p2) target bundleno = 324 (0x144), region = 36 }
   0xb   : > { %v867_v0 = vld [vmem:[%s1145_s1 + $0x38] sm:$0xff]   ;;  %v868_v1 = vld [vmem:[%s1145_s1 + $0x30] sm:$0xff]   ;;  %s1150_s16 = smov (!%p186_p3, %s736_s16), 1  ;;  %v869_v2 = vld [vmem:[%s1145_s1 + $0x28] sm:$0xff]  }
   0xc   : > { %795 = vmatprep.subr.bf16.mxu0 %v867_v0  ;;  %843 = vmatprep.subr.bf16.mxu1 %v867_v0  ;;  %s770_s23 = sshll.u32 %s1150_s16, 7  ;;  %v870_v3 = vld [vmem:[%s1145_s1 + $0x20] sm:$0xff]   ;;  %v871_v5 = vld [vmem:[%s1145_s1 + $0x18] sm:$0xff]   ;;  %v872_v6 = vld [vmem:[%s1145_s1 + $0x10] sm:$0xff]   ;;  %s193_s7 = scalar_lea.vmem %s1148_s4, %s1150_s16 }
   0xd   : > { %796 = vmatpush3.bf16.msra.mxu0 %v867_v0  ;;  %851 = vmatpush3.bf16.msra.mxu1 %v867_v0  ;;  %s947_s26 = scalar_lea.vmem %s1144_s0, %s770_s23  ;;  %v873_v8 = vld [vmem:[%s1145_s1 + $0x8] sm:$0xff]   ;;  %v874_v9 = vld [vmem:[%s1145_s1] sm:$0xff]   ;;  %v589_v43 = vld [vmem:[%s1147_s3 + $0x10] sm:$0xff] }
   0xe   : > { %797 = vmatprep.subr.bf16.mxu0 %v868_v1  ;;  %844 = vmatprep.subr.bf16.mxu1 %v868_v1  ;;  %v875_v4 = vld [vmem:[%s947_s26] sm:$0xff]   ;;  %v876_v10 = vld [vmem:[%s947_s26 + $0x8] sm:$0xff]   ;;  %v877_v12 = vld [vmem:[%s947_s26 + $0x10] sm:$0xff]  }
   0xf   : > { %811 = vmatprep.mubr.bf16.mxu0 %v875_v4  ;;  %v883_v7 = vld [vmem:[%s947_s26 + $0x40] sm:$0xff]   ;;  %v884_v11 = vld [vmem:[%s947_s26 + $0x48] sm:$0xff]   ;;  %v885_v13 = vld [vmem:[%s947_s26 + $0x50] sm:$0xff]  }
  0x10   : > { %827 = vmatprep.mubr.bf16.mxu1 %v883_v7  ;;  %v878_v14 = vld [vmem:[%s947_s26 + $0x18] sm:$0xff]   ;;  %v879_v16 = vld [vmem:[%s947_s26 + $0x20] sm:$0xff]   ;;  %v880_v18 = vld [vmem:[%s947_s26 + $0x28] sm:$0xff]  }
  0x11   : > { %798 = vmatpush3.bf16.msra.mxu0 %v868_v1  ;;  %852 = vmatpush3.bf16.msra.mxu1 %v868_v1  ;;  %v886_v15 = vld [vmem:[%s947_s26 + $0x58] sm:$0xff]   ;;  %v887_v17 = vld [vmem:[%s947_s26 + $0x60] sm:$0xff]   ;;  %v888_v19 = vld [vmem:[%s947_s26 + $0x68] sm:$0xff]  }
  0x12   : > { %799 = vmatprep.subr.bf16.mxu0 %v869_v2  ;;  %845 = vmatprep.subr.bf16.mxu1 %v869_v2  ;;  %v881_v20 = vld [vmem:[%s947_s26 + $0x30] sm:$0xff]   ;;  %v882_v22 = vld [vmem:[%s947_s26 + $0x38] sm:$0xff]   ;;  %v985_v26 = vld [vmem:[%s1146_s2] ss:$0 sm:$0xff] }
  0x13   : > { %v889_v21 = vld [vmem:[%s947_s26 + $0x70] sm:$0xff]   ;;  %v890_v23 = vld [vmem:[%s947_s26 + $0x78] sm:$0xff]   ;;  %v587_v37 = vld [vmem:[%s1147_s3] sm:$0xff] }
  0x14   : > { %v588_v38 = vld [vmem:[%s1147_s3 + $0x8] sm:$0xff]  ;;  %v590_v49 = vld [vmem:[%s1147_s3 + $0x18] sm:$0xff]  ;;  %v591_v56 = vld [vmem:[%s1147_s3 + $0x20] sm:$0xff] }
  0x15   : > { %800 = vmatpush3.bf16.msra.mxu0 %v869_v2  ;;  %853 = vmatpush3.bf16.msra.mxu1 %v869_v2  ;;  %v592_v62 = vld [vmem:[%s1147_s3 + $0x28] sm:$0xff] }
  0x16   : > { %801 = vmatprep.subr.bf16.mxu0 %v870_v3  ;;  %846 = vmatprep.subr.bf16.mxu1 %v870_v3 }
  0x19   : > { %802 = vmatpush3.bf16.msra.mxu0 %v870_v3  ;;  %854 = vmatpush3.bf16.msra.mxu1 %v870_v3 }
  0x1a   : > { %803 = vmatprep.subr.bf16.mxu0 %v871_v5  ;;  %847 = vmatprep.subr.bf16.mxu1 %v871_v5 }
  0x1d   : > { %804 = vmatpush3.bf16.msra.mxu0 %v871_v5  ;;  %855 = vmatpush3.bf16.msra.mxu1 %v871_v5  ;;  %v593_v5 = vld [vmem:[%s1147_s3 + $0x30] sm:$0xff] }
  0x1e   : > { %805 = vmatprep.subr.bf16.mxu0 %v872_v6  ;;  %848 = vmatprep.subr.bf16.mxu1 %v872_v6 }
  0x21   : > { %806 = vmatpush3.bf16.msra.mxu0 %v872_v6  ;;  %856 = vmatpush3.bf16.msra.mxu1 %v872_v6 }
  0x22   : > { %807 = vmatprep.subr.bf16.mxu0 %v873_v8  ;;  %849 = vmatprep.subr.bf16.mxu1 %v873_v8 }
  0x25   : > { %808 = vmatpush3.bf16.msra.mxu0 %v873_v8  ;;  %857 = vmatpush3.bf16.msra.mxu1 %v873_v8 }
  0x26   : > { %809 = vmatprep.subr.bf16.mxu0 %v874_v9  ;;  %850 = vmatprep.subr.bf16.mxu1 %v874_v9 }
  0x29   : > { %810 = vmatpush3.bf16.msra.mxu0 %v874_v9  ;;  %858 = vmatpush3.bf16.msra.mxu1 %v874_v9 }
  0x2c   : > { %812 = vmatmul.mubr.bf16.vlgmr.msra.gmra.mxu0 %v876_v10  ;;  %828 = vmatmul.mubr.bf16.vlgmr.msra.gmra.mxu1 %v884_v11  ;;  %v594_v11 = vld [vmem:[%s1147_s3 + $0x38] sm:$0xff] }
  0x2d   : > { %815 = vmatprep.mubr.bf16.mxu0 %v877_v12  ;;  %831 = vmatprep.mubr.bf16.mxu1 %v885_v13 }
  0x34   : > { %816 = vmatmul.mubr.bf16.gmra.mxu0 %v878_v14  ;;  %832 = vmatmul.mubr.bf16.gmra.mxu1 %v886_v15 }
  0x35   : > { %819 = vmatprep.mubr.bf16.mxu0 %v879_v16  ;;  %835 = vmatprep.mubr.bf16.mxu1 %v887_v17 }
  0x3c   : > { %820 = vmatmul.mubr.bf16.gmra.mxu0 %v880_v18  ;;  %836 = vmatmul.mubr.bf16.gmra.mxu1 %v888_v19  ;;  %v595_v18 = vld [vmem:[%s1147_s3 + $0x40] sm:$0xff] }
  0x3d   : > { %823 = vmatprep.mubr.bf16.mxu0 %v881_v20  ;;  %839 = vmatprep.mubr.bf16.mxu1 %v889_v21 }
  0x44   : > { %824 = vmatmul.mubr.bf16.gmra.mxu0 %v882_v22  ;;  %840 = vmatmul.mubr.bf16.gmra.mxu1 %v890_v23 }
  0xec   : > { %v813_v24 = vpop.f32.mrf.mxu0  ;;  %v980_v25 = vpop.f32.mrf.mxu1 }
  0xed   : > { %v437_v32 = vadd.f32 %v813_v24, %v985_v26  ;;  %v596_v24 = vld [vmem:[%s1147_s3 + $0x48] sm:$0xff] }
  0xee   : > { %v428_v27 = vpop.f32.mrf.mxu0  ;;  %v987_v28 = vpop.f32.mrf.mxu1 }
  0xef   : > { %v429_v29 = vadd.f32 %v985_v26, %v428_v27  ;;  %v557_v41 = vmax.f32 %v437_v32, 0.0 }
  0xf0   : > { %v814_v30 = vpop.f32.mrf.mxu0  ;;  %v990_v31 = vpop.f32.mrf.mxu1 }
  0xf1   : > { %v555_v34 = vmax.f32 %v429_v29, 0.0  ;;  %v440_v35 = vadd.f32 %v814_v30, %v985_v26  ;;  %v621_v52 = vmul.f32 %v589_v43, %v557_v41 }
  0xf2   : > { %v431_v33 = vpop.f32.mrf.mxu0  ;;  %v1001_v40 = vpop.f32.mrf.mxu1 }
  0xf3   : > { %v432_v36 = vadd.f32 %v985_v26, %v431_v33  ;;  %v619_v45 = vmul.f32 %v587_v37, %v555_v34  ;;  %v558_v46 = vmax.f32 %v440_v35, 0.0  ;;  %v597_v35 = vld [vmem:[%s1147_s3 + $0x50] sm:$0xff] }
  0xf4   : > { %v817_v39 = vpop.f32.mrf.mxu0  ;;  %v1010_v51 = vpop.f32.mrf.mxu1 }
  0xf5   : > { %v556_v42 = vmax.f32 %v432_v36, 0.0  ;;  %v453_v54 = vadd.f32 %v817_v39, %v985_v26  ;;  %v622_v58 = vmul.f32 %v590_v49, %v558_v46  ;;  %v599_v49 = vld [vmem:[%s1147_s3 + $0x60] sm:$0xff] }
  0xf6   : > { %v444_v44 = vpop.f32.mrf.mxu0  ;;  %v1021_v0 = vpop.f32.mrf.mxu1 }
  0xf7   : > { %v620_v47 = vmul.f32 %v588_v38, %v556_v42  ;;  %v445_v48 = vadd.f32 %v985_v26, %v444_v44  ;;  %v561_v1 = vmax.f32 %v453_v54, 0.0  ;;  %v598_v42 = vld [vmem:[%s1147_s3 + $0x58] sm:$0xff] }
  0xf8   : > { %v818_v50 = vpop.f32.mrf.mxu0  ;;  %v1030_v13 = vpop.f32.mrf.mxu1 }
  0xf9   : > { %v651_v53 = vadd.f32 %v620_v47, %v619_v45  ;;  %v559_v55 = vmax.f32 %v445_v48, 0.0  ;;  %v456_v60 = vadd.f32 %v818_v50, %v985_v26  ;;  %v625_v14 = vmul.f32 %v593_v5, %v561_v1 }
  0xfa   : > { %v447_v57 = vpop.f32.mrf.mxu0  ;;  %v511_v29 = vpop.f32.mrf.mxu1 }
  0xfb   : > { %v652_v59 = vadd.f32 %v651_v53, %v621_v52  ;;  %v448_v61 = vadd.f32 %v985_v26, %v447_v57  ;;  %v623_v2 = vmul.f32 %v591_v56, %v559_v55  ;;  %v562_v8 = vmax.f32 %v456_v60, 0.0  ;;  %v600_v57 = vld [vmem:[%s1147_s3 + $0x68] sm:$0xff] }
  0xfc   : > { %v821_v63 = vpop.f32.mrf.mxu0  ;;  %v1048_v44 = vpop.f32.mrf.mxu1  ;;  %v493_v56 = vadd.f32 %v985_v26, %v987_v28  ;;  %v602_v28 = vld [vmem:[%s1147_s3 + $0x78] sm:$0xff] }
  0xfd   : > { %v653_v3 = vadd.f32 %v652_v59, %v622_v58  ;;  %v560_v4 = vmax.f32 %v448_v61, 0.0  ;;  %v469_v16 = vadd.f32 %v821_v63, %v985_v26  ;;  %v626_v20 = vmul.f32 %v594_v11, %v562_v8  ;;  %v601_v63 = vld [vmem:[%s1147_s3 + $0x70] sm:$0xff] }
  0xfe   : > { %v460_v6 = vpop.f32.mrf.mxu0  ;;  %v524_v58 = vpop.f32.mrf.mxu1  ;;  %v571_v8 = vmax.f32 %v493_v56, 0.0  ;;  %v611_v56 = vld [vmem:[%s1147_s3 + $0xc0] sm:$0xff] }
  0xff   : > { %v654_v7 = vadd.f32 %v653_v3, %v623_v2  ;;  %v624_v9 = vmul.f32 %v592_v62, %v560_v4  ;;  %v461_v10 = vadd.f32 %v985_v26, %v460_v6  ;;  %v565_v30 = vmax.f32 %v469_v16, 0.0 }
 0x100   : > { %v822_v12 = vpop.f32.mrf.mxu0  ;;  %v496_v4 = vadd.f32 %v985_v26, %v1001_v40  ;;  %v838_v5 = vpop.f32.mrf.mxu1  ;;  %v504_v40 = vadd.f32 %v990_v31, %v985_v26  ;;  %v512_v31 = vadd.f32 %v985_v26, %v511_v29  ;;  %v520_v29 = vadd.f32 %v1030_v13, %v985_v26 }
 0x101   : > { %v655_v15 = vadd.f32 %v654_v7, %v624_v9  ;;  %v563_v17 = vmax.f32 %v461_v10, 0.0  ;;  %v472_v22 = vadd.f32 %v822_v12, %v985_v26  ;;  %v629_v45 = vmul.f32 %v597_v35, %v565_v30  ;;  %v603_v10 = vld [vmem:[%s1147_s3 + $0x80] sm:$0xff] }
 0x102   : > { %v463_v19 = vpop.f32.mrf.mxu0  ;;  %v501_v7 = vadd.f32 %v980_v25, %v985_v26  ;;  %v527_v16 = vpop.f32.mrf.mxu1 }
 0x103   : > { %v656_v21 = vadd.f32 %v655_v15, %v625_v14  ;;  %v464_v23 = vadd.f32 %v985_v26, %v463_v19  ;;  %v627_v32 = vmul.f32 %v595_v18, %v563_v17  ;;  %v566_v38 = vmax.f32 %v472_v22, 0.0  ;;  %v604_v15 = vld [vmem:[%s1147_s3 + $0x88] sm:$0xff] }
 0x104   : > { %v825_v27 = vpop.f32.mrf.mxu0  ;;  %v572_v14 = vmax.f32 %v496_v4, 0.0  ;;  %v573_v17 = vmax.f32 %v501_v7, 0.0  ;;  %v635_v18 = vmul.f32 %v603_v10, %v571_v8  ;;  %v509_v19 = vadd.f32 %v985_v26, %v1021_v0  ;;  %v614_v7 = vld [vmem:[%s1147_s3 + $0xd8] sm:$0xff] }
 0x105   : > { %v657_v33 = vadd.f32 %v656_v21, %v626_v20  ;;  %v564_v34 = vmax.f32 %v464_v23, 0.0  ;;  %v485_v47 = vadd.f32 %v825_v27, %v985_v26  ;;  %v630_v52 = vmul.f32 %v598_v42, %v566_v38  ;;  %v605_v20 = vld [vmem:[%s1147_s3 + $0x90] sm:$0xff]  ;;  %v841_v27 = vpop.f32.mrf.mxu1  ;;  %v608_v38 = vld [vmem:[%s1147_s3 + $0xa8] sm:$0xff] }
 0x106   : > { %v476_v36 = vpop.f32.mrf.mxu0  ;;  %v574_v21 = vmax.f32 %v504_v40, 0.0  ;;  %v636_v22 = vmul.f32 %v604_v15, %v572_v14  ;;  %v637_v30 = vmul.f32 %v605_v20, %v573_v17  ;;  %v575_v0 = vmax.f32 %v509_v19, 0.0  ;;  %v616_v17 = vld [vmem:[%s1147_s3 + $0xe8] sm:$0xff]  ;;  %v617_v20 = vld [vmem:[%s1147_s3 + $0xf0] sm:$0xff] }
 0x107   : > { %v658_v37 = vadd.f32 %v657_v33, %v627_v32  ;;  %v628_v39 = vmul.f32 %v596_v24, %v564_v34  ;;  %v477_v41 = vadd.f32 %v985_v26, %v476_v36  ;;  %v569_v59 = vmax.f32 %v485_v47, 0.0  ;;  %v606_v24 = vld [vmem:[%s1147_s3 + $0x98] sm:$0xff]  ;;  %v607_v34 = vld [vmem:[%s1147_s3 + $0xa0] sm:$0xff] }
 0x108   : > { %v826_v43 = vpop.f32.mrf.mxu0  ;;  %v517_v33 = vadd.f32 %v1010_v51, %v985_v26  ;;  %v638_v35 = vmul.f32 %v606_v24, %v574_v21  ;;  %v639_v42 = vmul.f32 %v607_v34, %v575_v0  ;;  %v525_v51 = vadd.f32 %v985_v26, %v524_v58 }
 0x109   : > { %v659_v46 = vadd.f32 %v658_v37, %v628_v39  ;;  %v567_v48 = vmax.f32 %v477_v41, 0.0  ;;  %v488_v54 = vadd.f32 %v826_v43, %v985_v26  ;;  %v633_v6 = vmul.f32 %v601_v63, %v569_v59  ;;  %v540_v39 = vpop.f32.mrf.mxu1 }
 0x10a   : > { %v479_v50 = vpop.f32.mrf.mxu0  ;;  %v576_v37 = vmax.f32 %v512_v31, 0.0  ;;  %v577_v41 = vmax.f32 %v517_v33, 0.0  ;;  %v578_v47 = vmax.f32 %v520_v29, 0.0  ;;  %v528_v13 = vadd.f32 %v985_v26, %v527_v16 }
 0x10b   : > { %v660_v53 = vadd.f32 %v659_v46, %v629_v45  ;;  %v480_v55 = vadd.f32 %v985_v26, %v479_v50  ;;  %v631_v60 = vmul.f32 %v599_v49, %v567_v48  ;;  %v570_v2 = vmax.f32 %v488_v54, 0.0  ;;  %v609_v45 = vld [vmem:[%s1147_s3 + $0xb0] sm:$0xff]  ;;  %v610_v49 = vld [vmem:[%s1147_s3 + $0xb8] sm:$0xff]  ;;  %v842_v50 = vpop.f32.mrf.mxu1 }
 0x10c   : > { %v640_v48 = vmul.f32 %v608_v38, %v576_v37  ;;  %v533_v54 = vadd.f32 %v1048_v44, %v985_v26  ;;  %v536_v59 = vadd.f32 %v838_v5, %v985_v26  ;;  %v541_v44 = vadd.f32 %v985_v26, %v540_v39 }
 0x10d   : > { %v661_v61 = vadd.f32 %v660_v53, %v630_v52  ;;  %v568_v62 = vmax.f32 %v480_v55, 0.0  ;;  %v634_v11 = vmul.f32 %v602_v28, %v570_v2  ;;  %v641_v52 = vmul.f32 %v609_v45, %v577_v41 }
 0x10e   : > { %v579_v55 = vmax.f32 %v525_v51, 0.0  ;;  %v581_v63 = vmax.f32 %v533_v54, 0.0  ;;  %v582_v28 = vmax.f32 %v536_v59, 0.0  ;;  %v549_v10 = vadd.f32 %v841_v27, %v985_v26 }
 0x10f   : > { %v662_v1 = vadd.f32 %v661_v61, %v631_v60  ;;  %v632_v3 = vmul.f32 %v600_v57, %v568_v62  ;;  %v642_v57 = vmul.f32 %v610_v49, %v578_v47  ;;  %v580_v60 = vmax.f32 %v528_v13, 0.0  ;;  %v612_v61 = vld [vmem:[%s1147_s3 + $0xc8] sm:$0xff]  ;;  %v543_v62 = vpop.f32.mrf.mxu1 }
 0x110   : > { %v544_v5 = vadd.f32 %v985_v26, %v543_v62  ;;  %v646_v40 = vmul.f32 %v614_v7, %v582_v28  ;;  %v552_v15 = vadd.f32 %v842_v50, %v985_v26  ;;  %v618_v26 = vld [vmem:[%s1147_s3 + $0xf8] sm:$0xff] }
 0x111   : > { %v663_v9 = vadd.f32 %v662_v1, %v632_v3  ;;  %v643_v1 = vmul.f32 %v611_v56, %v579_v55  ;;  %v613_v3 = vld [vmem:[%s1147_s3 + $0xd0] sm:$0xff] }
 0x112   : > { %v645_v8 = vmul.f32 %v613_v3, %v581_v63  ;;  %v584_v16 = vmax.f32 %v544_v5, 0.0 }
 0x113   : > { %v664_v12 = vadd.f32 %v663_v9, %v633_v6  ;;  %v644_v6 = vmul.f32 %v612_v61, %v580_v60 }
 0x115   : > { %v665_v25 = vadd.f32 %v664_v12, %v634_v11  ;;  %v583_v11 = vmax.f32 %v541_v44, 0.0  ;;  %v615_v12 = vld [vmem:[%s1147_s3 + $0xe0] sm:$0xff] }
 0x117   : > { %v666_v23 = vadd.f32 %v665_v25, %v635_v18  ;;  %v585_v18 = vmax.f32 %v549_v10, 0.0  ;;  %v647_v25 = vmul.f32 %v615_v12, %v583_v11 }
 0x119   : > { %v667_v32 = vadd.f32 %v666_v23, %v636_v22  ;;  %v586_v22 = vmax.f32 %v552_v15, 0.0  ;;  %v648_v23 = vmul.f32 %v616_v17, %v584_v16  ;;  %v649_v31 = vmul.f32 %v617_v20, %v585_v18 }
 0x11b   : > { %v668_v36 = vadd.f32 %v667_v32, %v637_v30  ;;  %v650_v27 = vmul.f32 %v618_v26, %v586_v22 }
 0x11d   : > { %v669_v43 = vadd.f32 %v668_v36, %v638_v35 }
 0x11f   : > { %v670_v46 = vadd.f32 %v669_v43, %v639_v42 }
 0x121   : > { %v671_v53 = vadd.f32 %v670_v46, %v640_v48 }
 0x123   : > { %v672_v58 = vadd.f32 %v671_v53, %v641_v52 }
 0x125   : > { %v673_v2 = vadd.f32 %v672_v58, %v642_v57 }
 0x127   : > { %v674_v4 = vadd.f32 %v673_v2, %v643_v1 }
 0x129   : > { %v675_v9 = vadd.f32 %v674_v4, %v644_v6 }
 0x12b   : > { %v676_v14 = vadd.f32 %v675_v9, %v645_v8 }
 0x12d   : > { %v677_v19 = vadd.f32 %v676_v14, %v646_v40 }
 0x12f   : > { %v678_v21 = vadd.f32 %v677_v19, %v647_v25 }
 0x131   : > { %v679_v24 = vadd.f32 %v678_v21, %v648_v23 }
 0x133   : > { %v680_v30 = vadd.f32 %v679_v24, %v649_v31 }
 0x135   : > { %v681_v32 = vadd.f32 %v680_v30, %v650_v27 }
 0x137   : > { %v682_v33 = vrot.slane %v681_v32, 4 }
 0x139   : > { %v683_v0 = vadd.f32 %v682_v33, %v681_v32 }
 0x13b   : > { %v684_v34 = vrot.slane %v683_v0, 2 }
 0x13d   : > { %v685_v35 = vadd.f32 %v684_v34, %v683_v0 }
 0x13f   : > { %v686_v36 = vrot.slane %v685_v35, 1 }
 0x141   : > { %v687_v29 = vadd.f32 %v686_v36, %v685_v35 }
 0x143   : > { %688 = vst [vmem:[%s193_s7] sm:$0x1] %v687_v29 }
 0x144 PF: > { %s14_s15 = sadd.s32 1, %s897_s15  }
 0x145   : > { %p11_p4 = scmp.ge.s32.totalorder %s14_s15, 4  }
 0x147   :  { %13 = sbr.rel (!%p11_p4) target bundleno = 1 (0x1), region = 66 }

</bundles_post_ra>
